<compile_context>
chip_gen: v6e
topology: v6e:2x2x1
jax: 0.10.0
libtpu: 0.0.40
codegen_flags: <defaults>
</compile_context>

<pallas_src>
import functools

import jax
import jax.numpy as jnp
from jax.experimental import pallas as pl
from jax.experimental.pallas import tpu as pltpu


def _policy_head_kernel(x_ref, cw_ref, cb_ref, fw_ref, fb_ref, o_ref):
    # x_ref:  (Bt, C, HW)      activation tile, native NCHW layout (producer dtype)
    # cw_ref: (2, C)           conv weight with BN scale folded in   (compute dtype)
    # cb_ref: (2, 1)           conv bias + BN shift folded           (f32)
    # fw_ref: (2, HW, A_pad)   fc weight split per conv out-channel  (compute dtype)
    # fb_ref: (1, A_pad)       fc bias; padded action lanes = -1e30  (f32)
    # o_ref:  (Bt, A_pad)      softmax probabilities                 (f32)
    bt = x_ref.shape[0]
    cdt = cw_ref.dtype

    x = x_ref[...]
    if x.dtype != cdt:
        x = x.astype(cdt)                                                 # in-kernel cast

    # 1x1 conv == per-position channel contraction: per batch row (2,C)@(C,HW).
    # The folded conv weight is broadcast along the batch so this matches Mosaic's
    # supported batched-matmul pattern; result lands as (Bt, 2, HW) with HW on
    # lanes, exactly what the FC consumes (no relayout).
    cw_b = jnp.broadcast_to(cw_ref[...][None], (bt,) + cw_ref.shape)      # (Bt, 2, C)
    h = jnp.einsum('boc,bcs->bos', cw_b, x,
                   preferred_element_type=jnp.float32)                    # (Bt, 2, HW)

    # folded BatchNorm (eval) + conv bias, then ReLU
    h = jnp.maximum(h + cb_ref[...], 0.0)
    h = h.astype(cdt)

    # fully connected over torch's channel-major flatten (k = c*HW + hw), expressed
    # as the sum of two (Bt, HW) @ (HW, A_pad) matmuls (M = Bt, lane-dense N).
    logits = jnp.dot(h[:, 0, :], fw_ref[0], preferred_element_type=jnp.float32)
    logits = logits + jnp.dot(h[:, 1, :], fw_ref[1],
                              preferred_element_type=jnp.float32)
    logits = logits + fb_ref[...]                                         # (Bt, A_pad)

    # softmax over actions (padded lanes carry a -1e30 bias -> exp == 0)
    m = jnp.max(logits, axis=-1, keepdims=True)
    e = jnp.exp(logits - m)
    inv = pl.reciprocal(jnp.sum(e, axis=-1, keepdims=True), approx=True)  # EUP path
    o_ref[...] = (e * inv).astype(o_ref.dtype)


@functools.partial(jax.jit,
                   static_argnames=("nr_actions", "batch_tile", "compute_dtype"))
def policy_head_forward(x_nchw, conv_w, conv_b, bn_gamma, bn_beta,
                        bn_mean, bn_var, fc_w, fc_b, *,
                        nr_actions, batch_tile=None, compute_dtype=jnp.bfloat16):
    B, C, H, W = x_nchw.shape
    assert C == 256
    HW = H * W
    A = nr_actions
    eps = 1e-5

    # --- tiling choices -------------------------------------------------------
    # lane-dense, MXU-width-friendly action padding
    A_pad = 128 if A <= 128 else ((A + 255) // 256) * 256

    # batch tile: ~10 MiB per x buffer (double-buffered by the pipeline).  The x
    # block is (Bt, C, HW) with HW on lanes, so VMEM pads HW up to 128 lanes.
    lane_pad = max(128, ((HW + 127) // 128) * 128)
    x_itemsize = jnp.dtype(x_nchw.dtype).itemsize
    if batch_tile is None:
        Bt = (10 * 1024 * 1024) // (C * lane_pad * x_itemsize)
        Bt = max(16, min(128, (Bt // 16) * 16))          # f32 x -> 80, bf16 x -> 128
        if B >= 32:
            # at least two batch tiles so the "parallel" axis can use both TCs (v7x)
            Bt = min(Bt, ((-(-B // 2)) + 7) // 8 * 8)
        else:
            Bt = min(Bt, ((B + 7) // 8) * 8)
    else:
        Bt = min(((batch_tile + 7) // 8) * 8, ((B + 7) // 8) * 8)
    Bt = max(8, Bt)
    n_tiles = -(-B // Bt)
    B_pad = n_tiles * Bt

    # --- parameter / layout prep (only small tensors are rewritten) ------------
    # x stays channels-first: (B, C, H, W) -> (B, C, HW) is a free reshape.
    x = x_nchw.reshape(B, C, HW)
    if B_pad != B:
        # Only copy of x in the wrapper; skipped when the batch is tile-aligned.
        x = jnp.pad(x, ((0, B_pad - B), (0, 0), (0, 0)))

    # fold BatchNorm (eval mode) + conv bias into the 1x1 conv
    bn_scale = bn_gamma / jnp.sqrt(bn_var + eps)                          # (2,)
    bn_shift = bn_beta - bn_mean * bn_scale                               # (2,)
    cw = (conv_w.reshape(2, C) * bn_scale[:, None]).astype(compute_dtype)
    cb = (bn_scale * conv_b + bn_shift).reshape(2, 1).astype(jnp.float32)

    # fc weight: torch flatten index is k = c*HW + hw  ->  (2, HW, A), pad A -> A_pad
    fw = jnp.transpose(fc_w.reshape(A, 2, HW), (1, 2, 0))                 # (2, HW, A)
    fw = jnp.pad(fw, ((0, 0), (0, 0), (0, A_pad - A))).astype(compute_dtype)
    fb = jnp.pad(fc_b.astype(jnp.float32), (0, A_pad - A),
                 constant_values=-1e30).reshape(1, A_pad)

    grid_spec = pltpu.PrefetchScalarGridSpec(
        num_scalar_prefetch=0,
        grid=(n_tiles,),
        in_specs=[
            pl.BlockSpec((Bt, C, HW),    lambda i: (i, 0, 0)),   # x batch tile (NCHW)
            pl.BlockSpec((2, C),         lambda i: (0, 0)),      # folded conv weight
            pl.BlockSpec((2, 1),         lambda i: (0, 0)),      # folded conv bias
            pl.BlockSpec((2, HW, A_pad), lambda i: (0, 0, 0)),   # fc weight
            pl.BlockSpec((1, A_pad),     lambda i: (0, 0)),      # fc bias (padded)
        ],
        out_specs=pl.BlockSpec((Bt, A_pad), lambda i: (i, 0)),
    )

    out = pl.pallas_call(
        _policy_head_kernel,
        out_shape=jax.ShapeDtypeStruct((B_pad, A_pad), jnp.float32),
        grid_spec=grid_spec,
        compiler_params=pltpu.CompilerParams(
            dimension_semantics=("parallel",),
            vmem_limit_bytes=48 * 1024 * 1024),
    )(x, cw, cb, fw, fb)

    return out[:B, :A]


def _reference(x_nchw, conv_w, conv_b, g, bta, mu, var, fc_w, fc_b):
    # pure-JAX reference of the PyTorch forward (eval-mode BN)
    eps = 1e-5
    B, C, H, W = x_nchw.shape
    h = jnp.einsum('oc,bchw->bohw', conv_w.reshape(2, C), x_nchw) \
        + conv_b.reshape(1, 2, 1, 1)
    h = (h - mu.reshape(1, 2, 1, 1)) / jnp.sqrt(var.reshape(1, 2, 1, 1) + eps)
    h = h * g.reshape(1, 2, 1, 1) + bta.reshape(1, 2, 1, 1)
    h = jnp.maximum(h, 0.0)
    flat = h.reshape(B, 2 * H * W)
    logits = flat @ fc_w.T + fc_b
    return jax.nn.softmax(logits, axis=1)


def _make_params(key, nr_actions, H, W):
    ks = jax.random.split(key, 7)
    conv_w = jax.random.normal(ks[0], (2, 256, 1, 1), jnp.float32) * 0.05
    conv_b = jax.random.normal(ks[1], (2,), jnp.float32) * 0.05
    bn_gamma = 1.0 + 0.1 * jax.random.normal(ks[2], (2,), jnp.float32)
    bn_beta = 0.1 * jax.random.normal(ks[3], (2,), jnp.float32)
    bn_mean = 0.1 * jax.random.normal(ks[4], (2,), jnp.float32)
    bn_var = 1.0 + 0.1 * jax.random.uniform(ks[5], (2,), jnp.float32)
    fc_w = jax.random.normal(ks[6], (nr_actions, 2 * H * W), jnp.float32) * 0.05
    fc_b = jnp.linspace(-0.1, 0.1, nr_actions, dtype=jnp.float32)
    return conv_w, conv_b, bn_gamma, bn_beta, bn_mean, bn_var, fc_w, fc_b


if __name__ == "__main__":
    key = jax.random.PRNGKey(0)
    k1, k2, kx1, kx2 = jax.random.split(key, 4)
    H = W = 8   # state_shape = (8, 8) -> input_length_linear = 2*8*8 = 128

    # case 1: f32 compute, tiny odd batch -> single (batch-padded) tile
    A1, B1 = 10, 3
    params1 = _make_params(k1, A1, H, W)
    x1 = jax.random.normal(kx1, (B1, 256, H, W), jnp.float32)
    out1 = jax.block_until_ready(
        policy_head_forward(x1, *params1, nr_actions=A1,
                            compute_dtype=jnp.float32))
    ref1 = _reference(x1, *params1)
    assert out1.shape == (B1, A1)
    # tolerance covers the approximate-reciprocal softmax denominator
    assert jnp.allclose(out1, ref1, atol=5e-3), "f32 mismatch vs reference"
    assert jnp.allclose(jnp.sum(out1, axis=1), 1.0, atol=1e-2)

    # case 2: bf16 activations + default bf16 compute, two batch tiles (megacore
    # path), action padding 200 -> 256
    A2, B2 = 200, 48
    params2 = _make_params(k2, A2, H, W)
    x2 = jax.random.normal(kx2, (B2, 256, H, W), jnp.float32).astype(jnp.bfloat16)
    out2 = jax.block_until_ready(
        policy_head_forward(x2, *params2, nr_actions=A2))
    ref2 = _reference(x2.astype(jnp.float32), *params2)
    assert out2.shape == (B2, A2)
    assert jnp.allclose(out2, ref2, atol=2e-2), "bf16 mismatch vs reference"
    assert jnp.allclose(jnp.sum(out2, axis=1), 1.0, atol=2e-2)

    print("KERNEL_OK")
</pallas_src>

<mosaic_0001>
module attributes {stable_mosaic.version = 11 : i64} {
  func.func @_policy_head_kernel(%arg0: i32, %arg1: memref<8x256x64xf32, #tpu.memory_space<vmem>>, %arg2: memref<2x256xf32, #tpu.memory_space<vmem>>, %arg3: memref<2x1xf32, #tpu.memory_space<vmem>>, %arg4: memref<2x64x128xf32, #tpu.memory_space<vmem>>, %arg5: memref<1x128xf32, #tpu.memory_space<vmem>>, %arg6: memref<8x128xf32, #tpu.memory_space<vmem>>) attributes {dimension_semantics = [#tpu.dimension_semantics<parallel>], iteration_bounds = array<i64: 1>, scalar_prefetch = 0 : i64, scratch_operands = 0 : i64, tpu.core_type = #tpu.core_type<tc>, window_params = [{transform_indices = @transform_0, window_bounds = array<i64: 8, 256, 64>}, {pipeline_mode = #tpu.pipeline_mode<synchronous>, transform_indices = @transform_1, window_bounds = array<i64: 2, 256>}, {pipeline_mode = #tpu.pipeline_mode<synchronous>, transform_indices = @transform_2, window_bounds = array<i64: 2, 1>}, {pipeline_mode = #tpu.pipeline_mode<synchronous>, transform_indices = @transform_3, window_bounds = array<i64: 2, 64, 128>}, {pipeline_mode = #tpu.pipeline_mode<synchronous>, transform_indices = @transform_4, window_bounds = array<i64: 1, 128>}, {transform_indices = @transform_5, window_bounds = array<i64: 8, 128>}]} {
    %c0 = arith.constant 0 : index
    %c0_0 = arith.constant 0 : index
    %c0_1 = arith.constant 0 : index
    %0 = vector.load %arg1[%c0, %c0_0, %c0_1] : memref<8x256x64xf32, #tpu.memory_space<vmem>>, vector<8x256x64xf32>
    %c0_2 = arith.constant 0 : index
    %c0_3 = arith.constant 0 : index
    %1 = vector.load %arg2[%c0_2, %c0_3] : memref<2x256xf32, #tpu.memory_space<vmem>>, vector<2x256xf32>
    %2 = vector.shape_cast %1 : vector<2x256xf32> to vector<1x2x256xf32>
    %3 = vector.shape_cast %2 : vector<1x2x256xf32> to vector<1x2x256xf32>
    %4 = vector.broadcast %3 : vector<1x2x256xf32> to vector<8x2x256xf32>
    "tpu.trace_start"() <{level = 10 : i32, message = "boc,bcs->bos"}> : () -> ()
    %cst = arith.constant dense<0.000000e+00> : vector<8x2x64xf32>
    %5 = tpu.matmul %4, %0, %cst {dimension_numbers = #tpu.dot_dimension_numbers<[2], [1], [1], [2], [0, 0, 0, 1, 1, 2], [0], [0]>} : vector<8x2x256xf32>, vector<8x256x64xf32>, vector<8x2x64xf32> -> vector<8x2x64xf32>
    "tpu.trace_stop"() : () -> ()
    %c0_4 = arith.constant 0 : index
    %c0_5 = arith.constant 0 : index
    %6 = vector.load %arg3[%c0_4, %c0_5] : memref<2x1xf32, #tpu.memory_space<vmem>>, vector<2x1xf32>
    %7 = vector.shape_cast %6 : vector<2x1xf32> to vector<1x2x1xf32>
    %8 = vector.broadcast %7 : vector<1x2x1xf32> to vector<8x2x64xf32>
    %9 = arith.addf %5, %8 : vector<8x2x64xf32>
    %cst_6 = arith.constant 0.000000e+00 : f32
    %10 = vector.broadcast %cst_6 : f32 to vector<8x2x64xf32>
    %11 = arith.maximumf %9, %10 : vector<8x2x64xf32>
    %12 = vector.extract_strided_slice %11 {offsets = [0, 0, 0], sizes = [8, 1, 64], strides = [1, 1, 1]} : vector<8x2x64xf32> to vector<8x1x64xf32>
    %13 = vector.shape_cast %12 : vector<8x1x64xf32> to vector<8x64xf32>
    %c0_7 = arith.constant 0 : index
    %c0_8 = arith.constant 0 : index
    %c0_9 = arith.constant 0 : index
    %14 = vector.load %arg4[%c0_7, %c0_8, %c0_9] : memref<2x64x128xf32, #tpu.memory_space<vmem>>, vector<1x64x128xf32>
    %15 = vector.shape_cast %14 : vector<1x64x128xf32> to vector<64x128xf32>
    %cst_10 = arith.constant dense<0.000000e+00> : vector<8x128xf32>
    %16 = tpu.matmul %13, %15, %cst_10 {dimension_numbers = #tpu.dot_dimension_numbers<[1], [0], [0], [1], [0, 0, 1, 1], [], []>} : vector<8x64xf32>, vector<64x128xf32>, vector<8x128xf32> -> vector<8x128xf32>
    %17 = vector.extract_strided_slice %11 {offsets = [0, 1, 0], sizes = [8, 1, 64], strides = [1, 1, 1]} : vector<8x2x64xf32> to vector<8x1x64xf32>
    %18 = vector.shape_cast %17 : vector<8x1x64xf32> to vector<8x64xf32>
    %c1 = arith.constant 1 : index
    %c0_11 = arith.constant 0 : index
    %c0_12 = arith.constant 0 : index
    %19 = vector.load %arg4[%c1, %c0_11, %c0_12] : memref<2x64x128xf32, #tpu.memory_space<vmem>>, vector<1x64x128xf32>
    %20 = vector.shape_cast %19 : vector<1x64x128xf32> to vector<64x128xf32>
    %cst_13 = arith.constant dense<0.000000e+00> : vector<8x128xf32>
    %21 = tpu.matmul %18, %20, %cst_13 {dimension_numbers = #tpu.dot_dimension_numbers<[1], [0], [0], [1], [0, 0, 1, 1], [], []>} : vector<8x64xf32>, vector<64x128xf32>, vector<8x128xf32> -> vector<8x128xf32>
    %22 = arith.addf %16, %21 : vector<8x128xf32>
    %c0_14 = arith.constant 0 : index
    %c0_15 = arith.constant 0 : index
    %23 = vector.load %arg5[%c0_14, %c0_15] : memref<1x128xf32, #tpu.memory_space<vmem>>, vector<1x128xf32>
    %24 = vector.broadcast %23 : vector<1x128xf32> to vector<8x128xf32>
    %25 = arith.addf %22, %24 : vector<8x128xf32>
    %cst_16 = arith.constant dense<0xFF800000> : vector<8xf32>
    %26 = vector.multi_reduction <maximumf>, %25, %cst_16 [1] : vector<8x128xf32> to vector<8xf32>
    %27 = vector.shape_cast %26 : vector<8xf32> to vector<8x1xf32>
    %28 = vector.broadcast %27 : vector<8x1xf32> to vector<8x128xf32>
    %29 = arith.subf %25, %28 : vector<8x128xf32>
    %30 = math.exp %29 : vector<8x128xf32>
    %cst_17 = arith.constant dense<0.000000e+00> : vector<8xf32>
    %31 = vector.multi_reduction <add>, %30, %cst_17 [1] : vector<8x128xf32> to vector<8xf32>
    %32 = vector.shape_cast %31 : vector<8xf32> to vector<8x1xf32>
    %33 = tpu.reciprocal %32 {approx = true} : vector<8x1xf32> -> vector<8x1xf32>
    %34 = vector.broadcast %33 : vector<8x1xf32> to vector<8x128xf32>
    %35 = arith.mulf %30, %34 : vector<8x128xf32>
    %c0_18 = arith.constant 0 : index
    %c0_19 = arith.constant 0 : index
    %36 = vector.load %arg6[%c0_18, %c0_19] : memref<8x128xf32, #tpu.memory_space<vmem>>, vector<8x128xf32>
    tpu.vector_store %arg6[%c0_18, %c0_19], %35 {strides = array<i32>} : memref<8x128xf32, #tpu.memory_space<vmem>>, vector<8x128xf32>,
    return
  }
  func.func @transform_0(%arg0: i32) -> (i32, i32, i32) {
    %c0_i32 = arith.constant 0 : i32
    %c0_i32_0 = arith.constant 0 : i32
    %c0_i32_1 = arith.constant 0 : i32
    return %arg0, %c0_i32, %c0_i32_0 : i32, i32, i32
  }
  func.func @transform_1(%arg0: i32) -> (i32, i32) {
    %c0_i32 = arith.constant 0 : i32
    %c0_i32_0 = arith.constant 0 : i32
    %c0_i32_1 = arith.constant 0 : i32
    return %c0_i32, %c0_i32_0 : i32, i32
  }
  func.func @transform_2(%arg0: i32) -> (i32, i32) {
    %c0_i32 = arith.constant 0 : i32
    %c0_i32_0 = arith.constant 0 : i32
    %c0_i32_1 = arith.constant 0 : i32
    return %c0_i32, %c0_i32_0 : i32, i32
  }
  func.func @transform_3(%arg0: i32) -> (i32, i32, i32) {
    %c0_i32 = arith.constant 0 : i32
    %c0_i32_0 = arith.constant 0 : i32
    %c0_i32_1 = arith.constant 0 : i32
    %c0_i32_2 = arith.constant 0 : i32
    return %c0_i32, %c0_i32_0, %c0_i32_1 : i32, i32, i32
  }
  func.func @transform_4(%arg0: i32) -> (i32, i32) {
    %c0_i32 = arith.constant 0 : i32
    %c0_i32_0 = arith.constant 0 : i32
    %c0_i32_1 = arith.constant 0 : i32
    return %c0_i32, %c0_i32_0 : i32, i32
  }
  func.func @transform_5(%arg0: i32) -> (i32, i32) {
    %c0_i32 = arith.constant 0 : i32
    %c0_i32_0 = arith.constant 0 : i32
    return %arg0, %c0_i32 : i32, i32
  }
}

</mosaic_0001>

<bundles_post_ra>
// kernel: policy_head_forward.1
= control target key start
LH: loop header
LB: loop body
LE: loop exit
PB: predicated region body
PF: predicated region fallthrough
CT: control target
= control target key end

     0   :  { %v1445_v3 = vmov 0   ;;  %vm1447_vm0 = vmmov 0   ;;  %vm888_vm1 = vcmask 1041409   ;;  %vm891_vm2 = vcmask 1042434   ;;  %s2330_s0 = inlined_call_operand.vmem [shape: f32[8,256,64], index: 0, kind: input, shape index: {}]   ;;  %s2331_s1 = inlined_call_operand.vmem [shape: f32[2,256], index: 1, kind: input, shape index: {}]   ;;  %s2332_s2 = inlined_call_operand.vmem [shape: f32[2,1], index: 2, kind: input, shape index: {}]   ;;  %s2333_s3 = inlined_call_operand.vmem [shape: f32[2,64,128], index: 3, kind: input, shape index: {}]   ;;  %s2334_s4 = inlined_call_operand.vmem [shape: f32[1,128], index: 4, kind: input, shape index: {}]   ;;  %s2335_s5 = inlined_call_operand.vmem [shape: f32[8,128], index: 5, kind: output, shape index: {}]  }
   0x1   :  { %v51_v0 = vld [vmem:[%s2330_s0 + $0xf8] sm:$0xff]  ;;  %1440 = vset.pattern.permute.xlu0 %v1445_v3  ;;  %v50_v5 = vld [vmem:[%s2330_s0 + $0xf0] sm:$0xff]  ;;  %v49_v9 = vld [vmem:[%s2330_s0 + $0xe8] sm:$0xff]  ;;  %vm894_vm3 = vcmask 1043459   ;;  %vm897_vm4 = vcmask 1044484   ;;  %vm900_vm5 = vcmask 1045509  }
   0x2   :  { %v83_v1 = vld [vmem:[%s2330_s0 + $0x1f8] sm:$0xff]  ;;  %1101 = vmatprep.subr.mxu0 %v51_v0  ;;  %v82_v6 = vld [vmem:[%s2330_s0 + $0x1f0] sm:$0xff]  ;;  %v81_v10 = vld [vmem:[%s2330_s0 + $0x1e8] sm:$0xff]  ;;  %vm903_vm6 = vcmask 1046534   ;;  %vm906_vm7 = vcmask 1047559   ;;  %vm908_vm8 = vcmask 523264  }
   0x3   :  { %v35_v2 = vld [vmem:[%s2330_s0 + $0x78] sm:$0xff]  ;;  %1136 = vmatprep.subr.mxu1 %v83_v1  ;;  %v34_v7 = vld [vmem:[%s2330_s0 + $0x70] sm:$0xff]  ;;  %v33_v11 = vld [vmem:[%s2330_s0 + $0x68] sm:$0xff] }
   0x4   :  { %v67_v4 = vld [vmem:[%s2330_s0 + $0x178] sm:$0xff]  ;;  %1102 = vmatpush3.msra.mxu0 %v35_v2  ;;  %v66_v8 = vld [vmem:[%s2330_s0 + $0x170] sm:$0xff]  ;;  %v65_v12 = vld [vmem:[%s2330_s0 + $0x168] sm:$0xff] }
   0x5   :  { %1137 = vmatpush3.msra.mxu1 %v67_v4  ;;  %1103 = vmatprep.subr.mxu0 %v50_v5  ;;  %v48_v13 = vld [vmem:[%s2330_s0 + $0xe0] sm:$0xff]  ;;  %v47_v17 = vld [vmem:[%s2330_s0 + $0xd8] sm:$0xff]  ;;  %v46_v21 = vld [vmem:[%s2330_s0 + $0xd0] sm:$0xff] }
   0x6   :  { %1138 = vmatprep.subr.mxu1 %v82_v6  ;;  %1104 = vmatpush3.msra.mxu0 %v34_v7  ;;  %v80_v14 = vld [vmem:[%s2330_s0 + $0x1e0] sm:$0xff]  ;;  %v79_v18 = vld [vmem:[%s2330_s0 + $0x1d8] sm:$0xff]  ;;  %v78_v22 = vld [vmem:[%s2330_s0 + $0x1d0] sm:$0xff] }
   0x7   :  { %1139 = vmatpush3.msra.mxu1 %v66_v8  ;;  %1105 = vmatprep.subr.mxu0 %v49_v9  ;;  %v32_v15 = vld [vmem:[%s2330_s0 + $0x60] sm:$0xff]  ;;  %v31_v19 = vld [vmem:[%s2330_s0 + $0x58] sm:$0xff]  ;;  %v30_v23 = vld [vmem:[%s2330_s0 + $0x50] sm:$0xff] }
   0x8   :  { %1140 = vmatprep.subr.mxu1 %v81_v10  ;;  %v64_v16 = vld [vmem:[%s2330_s0 + $0x160] sm:$0xff]  ;;  %1106 = vmatpush3.msra.mxu0 %v33_v11  ;;  %v63_v20 = vld [vmem:[%s2330_s0 + $0x158] sm:$0xff]  ;;  %v62_v24 = vld [vmem:[%s2330_s0 + $0x150] sm:$0xff] }
   0x9   :  { %1141 = vmatpush3.msra.mxu1 %v65_v12  ;;  %1107 = vmatprep.subr.mxu0 %v48_v13  ;;  %v45_v25 = vld [vmem:[%s2330_s0 + $0xc8] sm:$0xff]  ;;  %v44_v29 = vld [vmem:[%s2330_s0 + $0xc0] sm:$0xff]  ;;  %v43_v33 = vld [vmem:[%s2330_s0 + $0xb8] sm:$0xff] }
   0xa   :  { %1142 = vmatprep.subr.mxu1 %v80_v14  ;;  %1108 = vmatpush3.msra.mxu0 %v32_v15  ;;  %v77_v26 = vld [vmem:[%s2330_s0 + $0x1c8] sm:$0xff]  ;;  %v76_v30 = vld [vmem:[%s2330_s0 + $0x1c0] sm:$0xff]  ;;  %v75_v34 = vld [vmem:[%s2330_s0 + $0x1b8] sm:$0xff] }
   0xb   :  { %1143 = vmatpush3.msra.mxu1 %v64_v16  ;;  %1109 = vmatprep.subr.mxu0 %v47_v17  ;;  %v29_v27 = vld [vmem:[%s2330_s0 + $0x48] sm:$0xff]  ;;  %v28_v31 = vld [vmem:[%s2330_s0 + $0x40] sm:$0xff]  ;;  %v27_v35 = vld [vmem:[%s2330_s0 + $0x38] sm:$0xff] }
   0xc   :  { %1144 = vmatprep.subr.mxu1 %v79_v18  ;;  %1110 = vmatpush3.msra.mxu0 %v31_v19  ;;  %v61_v28 = vld [vmem:[%s2330_s0 + $0x148] sm:$0xff]  ;;  %v60_v32 = vld [vmem:[%s2330_s0 + $0x140] sm:$0xff]  ;;  %v59_v36 = vld [vmem:[%s2330_s0 + $0x138] sm:$0xff] }
   0xd   :  { %1145 = vmatpush3.msra.mxu1 %v63_v20  ;;  %1111 = vmatprep.subr.mxu0 %v46_v21  ;;  %v42_v37 = vld [vmem:[%s2330_s0 + $0xb0] sm:$0xff]  ;;  %v41_v41 = vld [vmem:[%s2330_s0 + $0xa8] sm:$0xff]  ;;  %v40_v45 = vld [vmem:[%s2330_s0 + $0xa0] sm:$0xff] }
   0xe   :  { %1146 = vmatprep.subr.mxu1 %v78_v22  ;;  %1112 = vmatpush3.msra.mxu0 %v30_v23  ;;  %v74_v38 = vld [vmem:[%s2330_s0 + $0x1b0] sm:$0xff]  ;;  %v73_v42 = vld [vmem:[%s2330_s0 + $0x1a8] sm:$0xff]  ;;  %v72_v46 = vld [vmem:[%s2330_s0 + $0x1a0] sm:$0xff] }
   0xf   :  { %1147 = vmatpush3.msra.mxu1 %v62_v24  ;;  %1113 = vmatprep.subr.mxu0 %v45_v25  ;;  %v26_v39 = vld [vmem:[%s2330_s0 + $0x30] sm:$0xff]  ;;  %v25_v43 = vld [vmem:[%s2330_s0 + $0x28] sm:$0xff]  ;;  %v24_v47 = vld [vmem:[%s2330_s0 + $0x20] sm:$0xff] }
  0x10   :  { %1148 = vmatprep.subr.mxu1 %v77_v26  ;;  %1114 = vmatpush3.msra.mxu0 %v29_v27  ;;  %v58_v40 = vld [vmem:[%s2330_s0 + $0x130] sm:$0xff]  ;;  %v57_v44 = vld [vmem:[%s2330_s0 + $0x128] sm:$0xff]  ;;  %v56_v48 = vld [vmem:[%s2330_s0 + $0x120] sm:$0xff] }
  0x11   :  { %1149 = vmatpush3.msra.mxu1 %v61_v28  ;;  %1115 = vmatprep.subr.mxu0 %v44_v29  ;;  %v39_v49 = vld [vmem:[%s2330_s0 + $0x98] sm:$0xff]  ;;  %v38_v53 = vld [vmem:[%s2330_s0 + $0x90] sm:$0xff]  ;;  %v1649_v57 = vld.sshfl [vmem:[%s2331_s1] sm:$0x33 pattern:$0x76325410] }
  0x12   :  { %1150 = vmatprep.subr.mxu1 %v76_v30  ;;  %1116 = vmatpush3.msra.mxu0 %v28_v31  ;;  %v71_v50 = vld [vmem:[%s2330_s0 + $0x198] sm:$0xff]  ;;  %v70_v54 = vld [vmem:[%s2330_s0 + $0x190] sm:$0xff]  ;;  %v37_v58 = vld [vmem:[%s2330_s0 + $0x88] sm:$0xff]  ;;  %v1671_v0 = vcombine.high %v1649_v57, %v1649_v57 }
  0x13   :  { %1151 = vmatpush3.msra.mxu1 %v60_v32  ;;  %1117 = vmatprep.subr.mxu0 %v43_v33  ;;  %v23_v51 = vld [vmem:[%s2330_s0 + $0x18] sm:$0xff]  ;;  %v22_v55 = vld [vmem:[%s2330_s0 + $0x10] sm:$0xff]  ;;  %v69_v59 = vld [vmem:[%s2330_s0 + $0x188] sm:$0xff] }
  0x14   :  { %1152 = vmatprep.subr.mxu1 %v75_v34  ;;  %1118 = vmatpush3.msra.mxu0 %v27_v35  ;;  %v55_v52 = vld [vmem:[%s2330_s0 + $0x118] sm:$0xff]  ;;  %v54_v56 = vld [vmem:[%s2330_s0 + $0x110] sm:$0xff]  ;;  %v21_v60 = vld [vmem:[%s2330_s0 + $0x8] sm:$0xff] }
  0x15   :  { %1153 = vmatpush3.msra.mxu1 %v59_v36  ;;  %1119 = vmatprep.subr.mxu0 %v42_v37  ;;  %v53_v61 = vld [vmem:[%s2330_s0 + $0x108] sm:$0xff]  ;;  %v36_v62 = vld [vmem:[%s2330_s0 + $0x80] sm:$0xff]  ;;  %v115_v3 = vld [vmem:[%s2330_s0 + $0x2f8] sm:$0xff] }
  0x16   :  { %1154 = vmatprep.subr.mxu1 %v74_v38  ;;  %1120 = vmatpush3.msra.mxu0 %v26_v39  ;;  %v68_v63 = vld [vmem:[%s2330_s0 + $0x180] sm:$0xff]  ;;  %v147_v4 = vld [vmem:[%s2330_s0 + $0x3f8] sm:$0xff]  ;;  %v114_v7 = vld [vmem:[%s2330_s0 + $0x2f0] sm:$0xff] }
  0x17   :  { %1155 = vmatpush3.msra.mxu1 %v58_v40  ;;  %1121 = vmatprep.subr.mxu0 %v41_v41  ;;  %v20_v1 = vld [vmem:[%s2330_s0] sm:$0xff]  ;;  %v99_v5 = vld [vmem:[%s2330_s0 + $0x278] sm:$0xff]  ;;  %v146_v8 = vld [vmem:[%s2330_s0 + $0x3f0] sm:$0xff] }
  0x18   :  { %1156 = vmatprep.subr.mxu1 %v73_v42  ;;  %1122 = vmatpush3.msra.mxu0 %v25_v43  ;;  %v52_v2 = vld [vmem:[%s2330_s0 + $0x100] sm:$0xff]  ;;  %v131_v6 = vld [vmem:[%s2330_s0 + $0x378] sm:$0xff]  ;;  %v98_v9 = vld [vmem:[%s2330_s0 + $0x270] sm:$0xff] }
  0x19   :  { %1157 = vmatpush3.msra.mxu1 %v57_v44  ;;  %1123 = vmatprep.subr.mxu0 %v40_v45  ;;  %v130_v10 = vld [vmem:[%s2330_s0 + $0x370] sm:$0xff]  ;;  %v113_v11 = vld [vmem:[%s2330_s0 + $0x2e8] sm:$0xff]  ;;  %v112_v15 = vld [vmem:[%s2330_s0 + $0x2e0] sm:$0xff] }
  0x1a   :  { %1158 = vmatprep.subr.mxu1 %v72_v46  ;;  %1124 = vmatpush3.msra.mxu0 %v24_v47  ;;  %v145_v12 = vld [vmem:[%s2330_s0 + $0x3e8] sm:$0xff]  ;;  %v144_v16 = vld [vmem:[%s2330_s0 + $0x3e0] sm:$0xff]  ;;  %v111_v19 = vld [vmem:[%s2330_s0 + $0x2d8] sm:$0xff] }
  0x1b   :  { %1159 = vmatpush3.msra.mxu1 %v56_v48  ;;  %1125 = vmatprep.subr.mxu0 %v39_v49  ;;  %v97_v13 = vld [vmem:[%s2330_s0 + $0x268] sm:$0xff]  ;;  %v96_v17 = vld [vmem:[%s2330_s0 + $0x260] sm:$0xff]  ;;  %v143_v20 = vld [vmem:[%s2330_s0 + $0x3d8] sm:$0xff] }
  0x1c   :  { %1160 = vmatprep.subr.mxu1 %v71_v50  ;;  %1126 = vmatpush3.msra.mxu0 %v23_v51  ;;  %v129_v14 = vld [vmem:[%s2330_s0 + $0x368] sm:$0xff]  ;;  %v128_v18 = vld [vmem:[%s2330_s0 + $0x360] sm:$0xff]  ;;  %v95_v21 = vld [vmem:[%s2330_s0 + $0x258] sm:$0xff] }
  0x1d   :  { %1161 = vmatpush3.msra.mxu1 %v55_v52  ;;  %1127 = vmatprep.subr.mxu0 %v38_v53  ;;  %v127_v22 = vld [vmem:[%s2330_s0 + $0x358] sm:$0xff]  ;;  %v110_v23 = vld [vmem:[%s2330_s0 + $0x2d0] sm:$0xff]  ;;  %v109_v27 = vld [vmem:[%s2330_s0 + $0x2c8] sm:$0xff] }
  0x1e   :  { %1162 = vmatprep.subr.mxu1 %v70_v54  ;;  %1128 = vmatpush3.msra.mxu0 %v22_v55  ;;  %v142_v24 = vld [vmem:[%s2330_s0 + $0x3d0] sm:$0xff]  ;;  %v141_v28 = vld [vmem:[%s2330_s0 + $0x3c8] sm:$0xff]  ;;  %v108_v31 = vld [vmem:[%s2330_s0 + $0x2c0] sm:$0xff] }
  0x1f   :  { %1163 = vmatpush3.msra.mxu1 %v54_v56  ;;  %1129 = vmatprep.subr.mxu0 %v37_v58  ;;  %v94_v25 = vld [vmem:[%s2330_s0 + $0x250] sm:$0xff]  ;;  %v93_v29 = vld [vmem:[%s2330_s0 + $0x248] sm:$0xff]  ;;  %v140_v32 = vld [vmem:[%s2330_s0 + $0x3c0] sm:$0xff] }
  0x20   :  { %1164 = vmatprep.subr.mxu1 %v69_v59  ;;  %1130 = vmatpush3.msra.mxu0 %v21_v60  ;;  %v126_v26 = vld [vmem:[%s2330_s0 + $0x350] sm:$0xff]  ;;  %v125_v30 = vld [vmem:[%s2330_s0 + $0x348] sm:$0xff]  ;;  %v92_v33 = vld [vmem:[%s2330_s0 + $0x240] sm:$0xff] }
  0x21   :  { %1165 = vmatpush3.msra.mxu1 %v53_v61  ;;  %1131 = vmatprep.subr.mxu0 %v36_v62  ;;  %v124_v34 = vld [vmem:[%s2330_s0 + $0x340] sm:$0xff]  ;;  %v107_v35 = vld [vmem:[%s2330_s0 + $0x2b8] sm:$0xff]  ;;  %v106_v39 = vld [vmem:[%s2330_s0 + $0x2b0] sm:$0xff] }
  0x22   :  { %1166 = vmatprep.subr.mxu1 %v68_v63  ;;  %1132 = vmatpush3.msra.mxu0 %v20_v1  ;;  %v139_v36 = vld [vmem:[%s2330_s0 + $0x3b8] sm:$0xff]  ;;  %v138_v40 = vld [vmem:[%s2330_s0 + $0x3b0] sm:$0xff]  ;;  %v105_v43 = vld [vmem:[%s2330_s0 + $0x2a8] sm:$0xff] }
  0x23   :  { %358 = vmatprep.mubr.f32.mxu0 %v1671_v0  ;;  %1167 = vmatpush3.msra.mxu1 %v52_v2  ;;  %v91_v37 = vld [vmem:[%s2330_s0 + $0x238] sm:$0xff]  ;;  %v90_v41 = vld [vmem:[%s2330_s0 + $0x230] sm:$0xff]  ;;  %v137_v44 = vld [vmem:[%s2330_s0 + $0x3a8] sm:$0xff] }
  0x24   :  { %428 = vmatprep.mubr.f32.mxu1 %v1671_v0  ;;  %359 = vmatmul.mubr.f32.vlgmr.msra.gmra.mxu0 %v1649_v57  ;;  %v123_v38 = vld [vmem:[%s2330_s0 + $0x338] sm:$0xff]  ;;  %v122_v42 = vld [vmem:[%s2330_s0 + $0x330] sm:$0xff]  ;;  %v89_v45 = vld [vmem:[%s2330_s0 + $0x228] sm:$0xff] }
  0x25   :  { %429 = vmatmul.mubr.f32.vlgmr.msra.gmra.mxu1 %v1649_v57  ;;  %1171 = vmatprep.subr.mxu0 %v115_v3  ;;  %v121_v46 = vld [vmem:[%s2330_s0 + $0x328] sm:$0xff]  ;;  %v104_v47 = vld [vmem:[%s2330_s0 + $0x2a0] sm:$0xff]  ;;  %v103_v51 = vld [vmem:[%s2330_s0 + $0x298] sm:$0xff] }
  0x26   :  { %1206 = vmatprep.subr.mxu1 %v147_v4  ;;  %1172 = vmatpush3.msra.mxu0 %v99_v5  ;;  %v136_v48 = vld [vmem:[%s2330_s0 + $0x3a0] sm:$0xff]  ;;  %v135_v52 = vld [vmem:[%s2330_s0 + $0x398] sm:$0xff]  ;;  %v102_v55 = vld [vmem:[%s2330_s0 + $0x290] sm:$0xff] }
  0x27   :  { %1207 = vmatpush3.msra.mxu1 %v131_v6  ;;  %1173 = vmatprep.subr.mxu0 %v114_v7  ;;  %v88_v49 = vld [vmem:[%s2330_s0 + $0x220] sm:$0xff]  ;;  %v87_v53 = vld [vmem:[%s2330_s0 + $0x218] sm:$0xff]  ;;  %v134_v56 = vld [vmem:[%s2330_s0 + $0x390] sm:$0xff] }
  0x28   :  { %1208 = vmatprep.subr.mxu1 %v146_v8  ;;  %1174 = vmatpush3.msra.mxu0 %v98_v9  ;;  %v120_v50 = vld [vmem:[%s2330_s0 + $0x320] sm:$0xff]  ;;  %v119_v54 = vld [vmem:[%s2330_s0 + $0x318] sm:$0xff]  ;;  %v86_v58 = vld [vmem:[%s2330_s0 + $0x210] sm:$0xff] }
  0x29   :  { %1209 = vmatpush3.msra.mxu1 %v130_v10  ;;  %1175 = vmatprep.subr.mxu0 %v113_v11  ;;  %v118_v59 = vld [vmem:[%s2330_s0 + $0x310] sm:$0xff]  ;;  %v101_v60 = vld [vmem:[%s2330_s0 + $0x288] sm:$0xff]  ;;  %v100_v1 = vld [vmem:[%s2330_s0 + $0x280] sm:$0xff] }
  0x2a   :  { %1210 = vmatprep.subr.mxu1 %v145_v12  ;;  %1176 = vmatpush3.msra.mxu0 %v97_v13  ;;  %v133_v61 = vld [vmem:[%s2330_s0 + $0x388] sm:$0xff]  ;;  %v132_v2 = vld [vmem:[%s2330_s0 + $0x380] sm:$0xff]  ;;  %v179_v5 = vld [vmem:[%s2330_s0 + $0x4f8] sm:$0xff] }
  0x2b   :  { %1211 = vmatpush3.msra.mxu1 %v129_v14  ;;  %1177 = vmatprep.subr.mxu0 %v112_v15  ;;  %v85_v62 = vld [vmem:[%s2330_s0 + $0x208] sm:$0xff]  ;;  %v84_v3 = vld [vmem:[%s2330_s0 + $0x200] sm:$0xff]  ;;  %v211_v6 = vld [vmem:[%s2330_s0 + $0x5f8] sm:$0xff] }
  0x2c   :  { %1212 = vmatprep.subr.mxu1 %v144_v16  ;;  %1178 = vmatpush3.msra.mxu0 %v96_v17  ;;  %v117_v63 = vld [vmem:[%s2330_s0 + $0x308] sm:$0xff]  ;;  %v116_v4 = vld [vmem:[%s2330_s0 + $0x300] sm:$0xff]  ;;  %v163_v7 = vld [vmem:[%s2330_s0 + $0x478] sm:$0xff] }
  0x2d   :  { %1213 = vmatpush3.msra.mxu1 %v128_v18  ;;  %1179 = vmatprep.subr.mxu0 %v111_v19  ;;  %v195_v8 = vld [vmem:[%s2330_s0 + $0x578] sm:$0xff]  ;;  %v178_v9 = vld [vmem:[%s2330_s0 + $0x4f0] sm:$0xff]  ;;  %v177_v13 = vld [vmem:[%s2330_s0 + $0x4e8] sm:$0xff] }
  0x2e   :  { %1214 = vmatprep.subr.mxu1 %v143_v20  ;;  %1180 = vmatpush3.msra.mxu0 %v95_v21  ;;  %v210_v10 = vld [vmem:[%s2330_s0 + $0x5f0] sm:$0xff]  ;;  %v209_v14 = vld [vmem:[%s2330_s0 + $0x5e8] sm:$0xff]  ;;  %v176_v17 = vld [vmem:[%s2330_s0 + $0x4e0] sm:$0xff] }
  0x2f   :  { %1215 = vmatpush3.msra.mxu1 %v127_v22  ;;  %1181 = vmatprep.subr.mxu0 %v110_v23  ;;  %v162_v11 = vld [vmem:[%s2330_s0 + $0x470] sm:$0xff]  ;;  %v161_v15 = vld [vmem:[%s2330_s0 + $0x468] sm:$0xff]  ;;  %v208_v18 = vld [vmem:[%s2330_s0 + $0x5e0] sm:$0xff] }
  0x30   :  { %1216 = vmatprep.subr.mxu1 %v142_v24  ;;  %1182 = vmatpush3.msra.mxu0 %v94_v25  ;;  %v194_v12 = vld [vmem:[%s2330_s0 + $0x570] sm:$0xff]  ;;  %v193_v16 = vld [vmem:[%s2330_s0 + $0x568] sm:$0xff]  ;;  %v160_v19 = vld [vmem:[%s2330_s0 + $0x460] sm:$0xff] }
  0x31   :  { %1217 = vmatpush3.msra.mxu1 %v126_v26  ;;  %1183 = vmatprep.subr.mxu0 %v109_v27  ;;  %v192_v20 = vld [vmem:[%s2330_s0 + $0x560] sm:$0xff]  ;;  %v175_v21 = vld [vmem:[%s2330_s0 + $0x4d8] sm:$0xff]  ;;  %v174_v25 = vld [vmem:[%s2330_s0 + $0x4d0] sm:$0xff] }
  0x32   :  { %1218 = vmatprep.subr.mxu1 %v141_v28  ;;  %1184 = vmatpush3.msra.mxu0 %v93_v29  ;;  %v207_v22 = vld [vmem:[%s2330_s0 + $0x5d8] sm:$0xff]  ;;  %v206_v26 = vld [vmem:[%s2330_s0 + $0x5d0] sm:$0xff]  ;;  %v173_v29 = vld [vmem:[%s2330_s0 + $0x4c8] sm:$0xff] }
  0x33   :  { %1219 = vmatpush3.msra.mxu1 %v125_v30  ;;  %1185 = vmatprep.subr.mxu0 %v108_v31  ;;  %v159_v23 = vld [vmem:[%s2330_s0 + $0x458] sm:$0xff]  ;;  %v158_v27 = vld [vmem:[%s2330_s0 + $0x450] sm:$0xff]  ;;  %v205_v30 = vld [vmem:[%s2330_s0 + $0x5c8] sm:$0xff] }
  0x34   :  { %1220 = vmatprep.subr.mxu1 %v140_v32  ;;  %1186 = vmatpush3.msra.mxu0 %v92_v33  ;;  %v191_v24 = vld [vmem:[%s2330_s0 + $0x558] sm:$0xff]  ;;  %v190_v28 = vld [vmem:[%s2330_s0 + $0x550] sm:$0xff]  ;;  %v157_v31 = vld [vmem:[%s2330_s0 + $0x448] sm:$0xff] }
  0x35   :  { %1221 = vmatpush3.msra.mxu1 %v124_v34  ;;  %1187 = vmatprep.subr.mxu0 %v107_v35  ;;  %v189_v32 = vld [vmem:[%s2330_s0 + $0x548] sm:$0xff]  ;;  %v172_v33 = vld [vmem:[%s2330_s0 + $0x4c0] sm:$0xff] }
  0x36   :  { %1222 = vmatprep.subr.mxu1 %v139_v36  ;;  %1188 = vmatpush3.msra.mxu0 %v91_v37  ;;  %v204_v34 = vld [vmem:[%s2330_s0 + $0x5c0] sm:$0xff]  ;;  %v171_v37 = vld [vmem:[%s2330_s0 + $0x4b8] sm:$0xff] }
  0x37   :  { %1223 = vmatpush3.msra.mxu1 %v123_v38  ;;  %1189 = vmatprep.subr.mxu0 %v106_v39  ;;  %v156_v35 = vld [vmem:[%s2330_s0 + $0x440] sm:$0xff]  ;;  %v203_v38 = vld [vmem:[%s2330_s0 + $0x5b8] sm:$0xff] }
  0x38   :  { %1224 = vmatprep.subr.mxu1 %v138_v40  ;;  %1190 = vmatpush3.msra.mxu0 %v90_v41  ;;  %v188_v36 = vld [vmem:[%s2330_s0 + $0x540] sm:$0xff]  ;;  %v155_v39 = vld [vmem:[%s2330_s0 + $0x438] sm:$0xff]  ;;  %v170_v41 = vld [vmem:[%s2330_s0 + $0x4b0] sm:$0xff] }
  0x39   :  { %1225 = vmatpush3.msra.mxu1 %v122_v42  ;;  %1191 = vmatprep.subr.mxu0 %v105_v43  ;;  %v187_v40 = vld [vmem:[%s2330_s0 + $0x538] sm:$0xff]  ;;  %v202_v42 = vld [vmem:[%s2330_s0 + $0x5b0] sm:$0xff] }
  0x3a   :  { %1226 = vmatprep.subr.mxu1 %v137_v44  ;;  %1192 = vmatpush3.msra.mxu0 %v89_v45  ;;  %v154_v43 = vld [vmem:[%s2330_s0 + $0x430] sm:$0xff]  ;;  %v169_v45 = vld [vmem:[%s2330_s0 + $0x4a8] sm:$0xff] }
  0x3b   :  { %1227 = vmatpush3.msra.mxu1 %v121_v46  ;;  %1193 = vmatprep.subr.mxu0 %v104_v47  ;;  %v186_v44 = vld [vmem:[%s2330_s0 + $0x530] sm:$0xff]  ;;  %v201_v46 = vld [vmem:[%s2330_s0 + $0x5a8] sm:$0xff] }
  0x3c   :  { %1228 = vmatprep.subr.mxu1 %v136_v48  ;;  %1194 = vmatpush3.msra.mxu0 %v88_v49  ;;  %v153_v47 = vld [vmem:[%s2330_s0 + $0x428] sm:$0xff]  ;;  %v168_v49 = vld [vmem:[%s2330_s0 + $0x4a0] sm:$0xff] }
  0x3d   :  { %1229 = vmatpush3.msra.mxu1 %v120_v50  ;;  %1195 = vmatprep.subr.mxu0 %v103_v51  ;;  %v185_v48 = vld [vmem:[%s2330_s0 + $0x528] sm:$0xff]  ;;  %v200_v50 = vld [vmem:[%s2330_s0 + $0x5a0] sm:$0xff] }
  0x3e   :  { %1230 = vmatprep.subr.mxu1 %v135_v52  ;;  %1196 = vmatpush3.msra.mxu0 %v87_v53  ;;  %v152_v51 = vld [vmem:[%s2330_s0 + $0x420] sm:$0xff]  ;;  %v167_v53 = vld [vmem:[%s2330_s0 + $0x498] sm:$0xff] }
  0x3f   :  { %1231 = vmatpush3.msra.mxu1 %v119_v54  ;;  %1197 = vmatprep.subr.mxu0 %v102_v55  ;;  %v184_v52 = vld [vmem:[%s2330_s0 + $0x520] sm:$0xff]  ;;  %v199_v54 = vld [vmem:[%s2330_s0 + $0x598] sm:$0xff] }
  0x40   :  { %1232 = vmatprep.subr.mxu1 %v134_v56  ;;  %1198 = vmatpush3.msra.mxu0 %v86_v58  ;;  %v151_v55 = vld [vmem:[%s2330_s0 + $0x418] sm:$0xff]  ;;  %v166_v58 = vld [vmem:[%s2330_s0 + $0x490] sm:$0xff] }
  0x41   :  { %1233 = vmatpush3.msra.mxu1 %v118_v59  ;;  %1199 = vmatprep.subr.mxu0 %v101_v60  ;;  %v183_v56 = vld [vmem:[%s2330_s0 + $0x518] sm:$0xff]  ;;  %v198_v59 = vld [vmem:[%s2330_s0 + $0x590] sm:$0xff] }
  0x42   :  { %1234 = vmatprep.subr.mxu1 %v133_v61  ;;  %1200 = vmatpush3.msra.mxu0 %v85_v62  ;;  %v150_v60 = vld [vmem:[%s2330_s0 + $0x410] sm:$0xff]  ;;  %v165_v62 = vld [vmem:[%s2330_s0 + $0x488] sm:$0xff] }
  0x43   :  { %1235 = vmatpush3.msra.mxu1 %v117_v63  ;;  %1201 = vmatprep.subr.mxu0 %v100_v1  ;;  %v182_v61 = vld [vmem:[%s2330_s0 + $0x510] sm:$0xff]  ;;  %v197_v63 = vld [vmem:[%s2330_s0 + $0x588] sm:$0xff] }
  0x44   :  { %1236 = vmatprep.subr.mxu1 %v132_v2  ;;  %1202 = vmatpush3.msra.mxu0 %v84_v3  ;;  %v149_v1 = vld [vmem:[%s2330_s0 + $0x408] sm:$0xff]  ;;  %v164_v3 = vld [vmem:[%s2330_s0 + $0x480] sm:$0xff] }
  0x45   :  { %498 = vmatprep.mubr.f32.mxu0 %v1671_v0  ;;  %1237 = vmatpush3.msra.mxu1 %v116_v4  ;;  %v181_v2 = vld [vmem:[%s2330_s0 + $0x508] sm:$0xff]  ;;  %v196_v4 = vld [vmem:[%s2330_s0 + $0x580] sm:$0xff] }
  0x46   :  { %568 = vmatprep.mubr.f32.mxu1 %v1671_v0  ;;  %499 = vmatmul.mubr.f32.vlgmr.msra.gmra.mxu0 %v1649_v57 }
  0x47   :  { %569 = vmatmul.mubr.f32.vlgmr.msra.gmra.mxu1 %v1649_v57  ;;  %1241 = vmatprep.subr.mxu0 %v179_v5  ;;  %v148_v5 = vld [vmem:[%s2330_s0 + $0x400] sm:$0xff] }
  0x48   :  { %1276 = vmatprep.subr.mxu1 %v211_v6  ;;  %1242 = vmatpush3.msra.mxu0 %v163_v7  ;;  %v180_v6 = vld [vmem:[%s2330_s0 + $0x500] sm:$0xff]  ;;  %v243_v7 = vld [vmem:[%s2330_s0 + $0x6f8] sm:$0xff] }
  0x49   :  { %1277 = vmatpush3.msra.mxu1 %v195_v8  ;;  %1243 = vmatprep.subr.mxu0 %v178_v9  ;;  %v275_v8 = vld [vmem:[%s2330_s0 + $0x7f8] sm:$0xff] }
  0x4a   :  { %1278 = vmatprep.subr.mxu1 %v210_v10  ;;  %1244 = vmatpush3.msra.mxu0 %v162_v11  ;;  %v227_v9 = vld [vmem:[%s2330_s0 + $0x678] sm:$0xff]  ;;  %v242_v11 = vld [vmem:[%s2330_s0 + $0x6f0] sm:$0xff] }
  0x4b   :  { %1279 = vmatpush3.msra.mxu1 %v194_v12  ;;  %1245 = vmatprep.subr.mxu0 %v177_v13  ;;  %v259_v10 = vld [vmem:[%s2330_s0 + $0x778] sm:$0xff]  ;;  %v274_v12 = vld [vmem:[%s2330_s0 + $0x7f0] sm:$0xff] }
  0x4c   :  { %1280 = vmatprep.subr.mxu1 %v209_v14  ;;  %1246 = vmatpush3.msra.mxu0 %v161_v15  ;;  %v226_v13 = vld [vmem:[%s2330_s0 + $0x670] sm:$0xff]  ;;  %v241_v15 = vld [vmem:[%s2330_s0 + $0x6e8] sm:$0xff] }
  0x4d   :  { %1281 = vmatpush3.msra.mxu1 %v193_v16  ;;  %1247 = vmatprep.subr.mxu0 %v176_v17  ;;  %v258_v14 = vld [vmem:[%s2330_s0 + $0x770] sm:$0xff]  ;;  %v273_v16 = vld [vmem:[%s2330_s0 + $0x7e8] sm:$0xff] }
  0x4e   :  { %1282 = vmatprep.subr.mxu1 %v208_v18  ;;  %1248 = vmatpush3.msra.mxu0 %v160_v19  ;;  %v225_v17 = vld [vmem:[%s2330_s0 + $0x668] sm:$0xff]  ;;  %v240_v19 = vld [vmem:[%s2330_s0 + $0x6e0] sm:$0xff] }
  0x4f   :  { %1283 = vmatpush3.msra.mxu1 %v192_v20  ;;  %1249 = vmatprep.subr.mxu0 %v175_v21  ;;  %v257_v18 = vld [vmem:[%s2330_s0 + $0x768] sm:$0xff]  ;;  %v272_v20 = vld [vmem:[%s2330_s0 + $0x7e0] sm:$0xff] }
  0x50   :  { %1284 = vmatprep.subr.mxu1 %v207_v22  ;;  %1250 = vmatpush3.msra.mxu0 %v159_v23  ;;  %v224_v21 = vld [vmem:[%s2330_s0 + $0x660] sm:$0xff]  ;;  %v239_v23 = vld [vmem:[%s2330_s0 + $0x6d8] sm:$0xff] }
  0x51   :  { %1285 = vmatpush3.msra.mxu1 %v191_v24  ;;  %1251 = vmatprep.subr.mxu0 %v174_v25  ;;  %v256_v22 = vld [vmem:[%s2330_s0 + $0x760] sm:$0xff]  ;;  %v271_v24 = vld [vmem:[%s2330_s0 + $0x7d8] sm:$0xff] }
  0x52   :  { %1286 = vmatprep.subr.mxu1 %v206_v26  ;;  %1252 = vmatpush3.msra.mxu0 %v158_v27  ;;  %v277_v25 = vld [vmem:[%s2332_s2] sm:$0x3]  ;;  %v223_v26 = vld [vmem:[%s2330_s0 + $0x658] sm:$0xff] }
  0x53   :  { %1287 = vmatpush3.msra.mxu1 %v190_v28  ;;  %1253 = vmatprep.subr.mxu0 %v173_v29  ;;  %v255_v27 = vld [vmem:[%s2330_s0 + $0x758] sm:$0xff]  ;;  %v238_v28 = vld [vmem:[%s2330_s0 + $0x6d0] sm:$0xff] }
  0x54   :  { %1288 = vmatprep.subr.mxu1 %v205_v30  ;;  %1254 = vmatpush3.msra.mxu0 %v157_v31  ;;  %v270_v29 = vld [vmem:[%s2330_s0 + $0x7d0] sm:$0xff] }
  0x55   :  { %1289 = vmatpush3.msra.mxu1 %v189_v32  ;;  %1255 = vmatprep.subr.mxu0 %v172_v33  ;;  %v222_v30 = vld [vmem:[%s2330_s0 + $0x650] sm:$0xff]  ;;  %v237_v32 = vld [vmem:[%s2330_s0 + $0x6c8] sm:$0xff] }
  0x56   :  { %1290 = vmatprep.subr.mxu1 %v204_v34  ;;  %1256 = vmatpush3.msra.mxu0 %v156_v35  ;;  %v254_v31 = vld [vmem:[%s2330_s0 + $0x750] sm:$0xff]  ;;  %v269_v33 = vld [vmem:[%s2330_s0 + $0x7c8] sm:$0xff] }
  0x57   :  { %1291 = vmatpush3.msra.mxu1 %v188_v36  ;;  %1257 = vmatprep.subr.mxu0 %v171_v37  ;;  %v221_v34 = vld [vmem:[%s2330_s0 + $0x648] sm:$0xff]  ;;  %v236_v36 = vld [vmem:[%s2330_s0 + $0x6c0] sm:$0xff] }
  0x58   :  { %1292 = vmatprep.subr.mxu1 %v203_v38  ;;  %1258 = vmatpush3.msra.mxu0 %v155_v39  ;;  %v253_v35 = vld [vmem:[%s2330_s0 + $0x748] sm:$0xff]  ;;  %v268_v37 = vld [vmem:[%s2330_s0 + $0x7c0] sm:$0xff] }
  0x59   :  { %1293 = vmatpush3.msra.mxu1 %v187_v40  ;;  %1259 = vmatprep.subr.mxu0 %v170_v41  ;;  %v220_v38 = vld [vmem:[%s2330_s0 + $0x640] sm:$0xff]  ;;  %v235_v40 = vld [vmem:[%s2330_s0 + $0x6b8] sm:$0xff] }
  0x5a   :  { %1294 = vmatprep.subr.mxu1 %v202_v42  ;;  %1260 = vmatpush3.msra.mxu0 %v154_v43  ;;  %v252_v39 = vld [vmem:[%s2330_s0 + $0x740] sm:$0xff]  ;;  %v267_v41 = vld [vmem:[%s2330_s0 + $0x7b8] sm:$0xff] }
  0x5b   :  { %1295 = vmatpush3.msra.mxu1 %v186_v44  ;;  %1261 = vmatprep.subr.mxu0 %v169_v45  ;;  %v219_v42 = vld [vmem:[%s2330_s0 + $0x638] sm:$0xff]  ;;  %v234_v44 = vld [vmem:[%s2330_s0 + $0x6b0] sm:$0xff] }
  0x5c   :  { %1296 = vmatprep.subr.mxu1 %v201_v46  ;;  %1262 = vmatpush3.msra.mxu0 %v153_v47  ;;  %v251_v43 = vld [vmem:[%s2330_s0 + $0x738] sm:$0xff]  ;;  %v266_v45 = vld [vmem:[%s2330_s0 + $0x7b0] sm:$0xff] }
  0x5d   :  { %1297 = vmatpush3.msra.mxu1 %v185_v48  ;;  %1263 = vmatprep.subr.mxu0 %v168_v49  ;;  %v218_v46 = vld [vmem:[%s2330_s0 + $0x630] sm:$0xff]  ;;  %v233_v48 = vld [vmem:[%s2330_s0 + $0x6a8] sm:$0xff] }
  0x5e   :  { %1298 = vmatprep.subr.mxu1 %v200_v50  ;;  %1264 = vmatpush3.msra.mxu0 %v152_v51  ;;  %v250_v47 = vld [vmem:[%s2330_s0 + $0x730] sm:$0xff]  ;;  %v265_v49 = vld [vmem:[%s2330_s0 + $0x7a8] sm:$0xff] }
  0x5f   :  { %1299 = vmatpush3.msra.mxu1 %v184_v52  ;;  %1265 = vmatprep.subr.mxu0 %v167_v53  ;;  %v217_v50 = vld [vmem:[%s2330_s0 + $0x628] sm:$0xff]  ;;  %v232_v52 = vld [vmem:[%s2330_s0 + $0x6a0] sm:$0xff] }
  0x60   :  { %1300 = vmatprep.subr.mxu1 %v199_v54  ;;  %1266 = vmatpush3.msra.mxu0 %v151_v55  ;;  %v249_v51 = vld [vmem:[%s2330_s0 + $0x728] sm:$0xff]  ;;  %v264_v53 = vld [vmem:[%s2330_s0 + $0x7a0] sm:$0xff] }
  0x61   :  { %1301 = vmatpush3.msra.mxu1 %v183_v56  ;;  %1267 = vmatprep.subr.mxu0 %v166_v58  ;;  %v216_v54 = vld [vmem:[%s2330_s0 + $0x620] sm:$0xff]  ;;  %v231_v56 = vld [vmem:[%s2330_s0 + $0x698] sm:$0xff] }
  0x62   :  { %1302 = vmatprep.subr.mxu1 %v198_v59  ;;  %1268 = vmatpush3.msra.mxu0 %v150_v60  ;;  %v248_v55 = vld [vmem:[%s2330_s0 + $0x720] sm:$0xff]  ;;  %v263_v58 = vld [vmem:[%s2330_s0 + $0x798] sm:$0xff] }
  0x63   :  { %1303 = vmatpush3.msra.mxu1 %v182_v61  ;;  %1269 = vmatprep.subr.mxu0 %v165_v62  ;;  %v215_v59 = vld [vmem:[%s2330_s0 + $0x618] sm:$0xff]  ;;  %v230_v61 = vld [vmem:[%s2330_s0 + $0x690] sm:$0xff] }
  0x64   :  { %1304 = vmatprep.subr.mxu1 %v197_v63  ;;  %1270 = vmatpush3.msra.mxu0 %v149_v1  ;;  %v247_v60 = vld [vmem:[%s2330_s0 + $0x718] sm:$0xff]  ;;  %v262_v62 = vld [vmem:[%s2330_s0 + $0x790] sm:$0xff] }
  0x65   :  { %1305 = vmatpush3.msra.mxu1 %v181_v2  ;;  %1271 = vmatprep.subr.mxu0 %v164_v3  ;;  %v214_v63 = vld [vmem:[%s2330_s0 + $0x610] sm:$0xff]  ;;  %v229_v2 = vld [vmem:[%s2330_s0 + $0x688] sm:$0xff] }
  0x66   :  { %1306 = vmatprep.subr.mxu1 %v196_v4  ;;  %1272 = vmatpush3.msra.mxu0 %v148_v5  ;;  %v246_v1 = vld [vmem:[%s2330_s0 + $0x710] sm:$0xff]  ;;  %v261_v3 = vld [vmem:[%s2330_s0 + $0x788] sm:$0xff] }
  0x67   :  { %638 = vmatprep.mubr.f32.mxu0 %v1671_v0  ;;  %1307 = vmatpush3.msra.mxu1 %v180_v6  ;;  %v213_v4 = vld [vmem:[%s2330_s0 + $0x608] sm:$0xff]  ;;  %v228_v6 = vld [vmem:[%s2330_s0 + $0x680] sm:$0xff] }
  0x68   :  { %708 = vmatprep.mubr.f32.mxu1 %v1671_v0  ;;  %639 = vmatmul.mubr.f32.vlgmr.msra.gmra.mxu0 %v1649_v57  ;;  %v245_v5 = vld [vmem:[%s2330_s0 + $0x708] sm:$0xff] }
  0x69   :  { %709 = vmatmul.mubr.f32.vlgmr.msra.gmra.mxu1 %v1649_v57  ;;  %1311 = vmatprep.subr.mxu0 %v243_v7  ;;  %v260_v7 = vld [vmem:[%s2330_s0 + $0x780] sm:$0xff] }
  0x6a   :  { %1346 = vmatprep.subr.mxu1 %v275_v8  ;;  %1312 = vmatpush3.msra.mxu0 %v227_v9  ;;  %v212_v8 = vld [vmem:[%s2330_s0 + $0x600] sm:$0xff] }
  0x6b   :  { %1347 = vmatpush3.msra.mxu1 %v259_v10  ;;  %1313 = vmatprep.subr.mxu0 %v242_v11  ;;  %v244_v9 = vld [vmem:[%s2330_s0 + $0x700] sm:$0xff]  ;;  %v1446_v10 = vmov 0.0   ;;  %v1097_v11 = vld [vmem:[%s2333_s3 + $0x78] sm:$0xff] }
  0x6c   :  { %1348 = vmatprep.subr.mxu1 %v274_v12  ;;  %1314 = vmatpush3.msra.mxu0 %v226_v13  ;;  %v869_v12 = vld [vmem:[%s2333_s3 + $0x38] sm:$0xff]  ;;  %v1095_v13 = vld [vmem:[%s2333_s3 + $0x68] sm:$0xff] }
  0x6d   :  { %1349 = vmatpush3.msra.mxu1 %v258_v14  ;;  %1315 = vmatprep.subr.mxu0 %v241_v15  ;;  %v867_v14 = vld [vmem:[%s2333_s3 + $0x28] sm:$0xff]  ;;  %v1094_v15 = vld [vmem:[%s2333_s3 + $0x60] sm:$0xff] }
  0x6e   :  { %1350 = vmatprep.subr.mxu1 %v273_v16  ;;  %1316 = vmatpush3.msra.mxu0 %v225_v17  ;;  %v866_v16 = vld [vmem:[%s2333_s3 + $0x20] sm:$0xff]  ;;  %v1093_v17 = vld [vmem:[%s2333_s3 + $0x58] sm:$0xff] }
  0x6f   :  { %1351 = vmatpush3.msra.mxu1 %v257_v18  ;;  %1317 = vmatprep.subr.mxu0 %v240_v19  ;;  %v865_v18 = vld [vmem:[%s2333_s3 + $0x18] sm:$0xff]  ;;  %v1092_v19 = vld [vmem:[%s2333_s3 + $0x50] sm:$0xff] }
  0x70   :  { %1352 = vmatprep.subr.mxu1 %v272_v20  ;;  %1318 = vmatpush3.msra.mxu0 %v224_v21  ;;  %v864_v20 = vld [vmem:[%s2333_s3 + $0x10] sm:$0xff]  ;;  %v1091_v21 = vld [vmem:[%s2333_s3 + $0x48] sm:$0xff] }
  0x71   :  { %1353 = vmatpush3.msra.mxu1 %v256_v22  ;;  %1319 = vmatprep.subr.mxu0 %v239_v23  ;;  %v863_v22 = vld [vmem:[%s2333_s3 + $0x8] sm:$0xff]  ;;  %v1090_v23 = vld [vmem:[%s2333_s3 + $0x40] sm:$0xff] }
  0x72   :  { %1354 = vmatprep.subr.mxu1 %v271_v24  ;;  %280 = vperm.xlu0 %1440, %v277_v25   ;;  %v862_v24 = vld [vmem:[%s2333_s3] sm:$0xff] }
  0x73   :  { %1320 = vmatpush3.msra.mxu0 %v223_v26  ;;  %1355 = vmatpush3.msra.mxu1 %v255_v27 }
  0x74   :  { %1321 = vmatprep.subr.mxu0 %v238_v28  ;;  %1356 = vmatprep.subr.mxu1 %v270_v29 }
  0x75   :  { %1322 = vmatpush3.msra.mxu0 %v222_v30  ;;  %1357 = vmatpush3.msra.mxu1 %v254_v31 }
  0x76   :  { %1323 = vmatprep.subr.mxu0 %v237_v32  ;;  %1358 = vmatprep.subr.mxu1 %v269_v33 }
  0x77   :  { %1324 = vmatpush3.msra.mxu0 %v221_v34  ;;  %1359 = vmatpush3.msra.mxu1 %v253_v35 }
  0x78   :  { %1325 = vmatprep.subr.mxu0 %v236_v36  ;;  %1360 = vmatprep.subr.mxu1 %v268_v37 }
  0x79   :  { %1326 = vmatpush3.msra.mxu0 %v220_v38  ;;  %1361 = vmatpush3.msra.mxu1 %v252_v39 }
  0x7a   :  { %1327 = vmatprep.subr.mxu0 %v235_v40  ;;  %1362 = vmatprep.subr.mxu1 %v267_v41 }
  0x7b   :  { %1328 = vmatpush3.msra.mxu0 %v219_v42  ;;  %1363 = vmatpush3.msra.mxu1 %v251_v43 }
  0x7c   :  { %1329 = vmatprep.subr.mxu0 %v234_v44  ;;  %1364 = vmatprep.subr.mxu1 %v266_v45 }
  0x7d   :  { %1330 = vmatpush3.msra.mxu0 %v218_v46  ;;  %1365 = vmatpush3.msra.mxu1 %v250_v47 }
  0x7e   :  { %1331 = vmatprep.subr.mxu0 %v233_v48  ;;  %1366 = vmatprep.subr.mxu1 %v265_v49 }
  0x7f   :  { %1332 = vmatpush3.msra.mxu0 %v217_v50  ;;  %1367 = vmatpush3.msra.mxu1 %v249_v51 }
  0x80   :  { %1333 = vmatprep.subr.mxu0 %v232_v52  ;;  %1368 = vmatprep.subr.mxu1 %v264_v53 }
  0x81   :  { %1334 = vmatpush3.msra.mxu0 %v216_v54  ;;  %1369 = vmatpush3.msra.mxu1 %v248_v55 }
  0x82   :  { %1335 = vmatprep.subr.mxu0 %v231_v56  ;;  %1370 = vmatprep.subr.mxu1 %v263_v58 }
  0x83   :  { %1336 = vmatpush3.msra.mxu0 %v215_v59  ;;  %1371 = vmatpush3.msra.mxu1 %v247_v60 }
  0x84   :  { %1337 = vmatprep.subr.mxu0 %v230_v61  ;;  %1372 = vmatprep.subr.mxu1 %v262_v62 }
  0x85   :  { %1338 = vmatpush3.msra.mxu0 %v214_v63  ;;  %1373 = vmatpush3.msra.mxu1 %v246_v1 }
  0x86   :  { %1339 = vmatprep.subr.mxu0 %v229_v2  ;;  %1374 = vmatprep.subr.mxu1 %v261_v3 }
  0x87   :  { %1340 = vmatpush3.msra.mxu0 %v213_v4  ;;  %1375 = vmatpush3.msra.mxu1 %v245_v5 }
  0x88   :  { %1341 = vmatprep.subr.mxu0 %v228_v6  ;;  %1376 = vmatprep.subr.mxu1 %v260_v7 }
  0x89   :  { %1342 = vmatpush3.msra.mxu0 %v212_v8  ;;  %778 = vmatprep.mubr.f32.mxu0 %v1671_v0 }
  0x8a   :  { %1377 = vmatpush3.msra.mxu1 %v244_v9  ;;  %848 = vmatprep.mubr.f32.mxu1 %v1671_v0  ;;  %v1096_v0 = vld [vmem:[%s2333_s3 + $0x70] sm:$0xff] }
  0x8b   :  { %779 = vmatmul.mubr.f32.vlgmr.msra.gmra.mxu0 %v1649_v57  ;;  %849 = vmatmul.mubr.f32.vlgmr.msra.gmra.mxu1 %v1649_v57  ;;  %v868_v57 = vld [vmem:[%s2333_s3 + $0x30] sm:$0xff] }
  0x8c   :  { %1399 = vmatprep.subr.mxu0 %v1446_v10  ;;  %1418 = vmatprep.subr.mxu1 %v1446_v10 }
  0x8d   :  { %1400 = vmatpush3.msra.mxu0 %v1097_v11  ;;  %1419 = vmatpush3.msra.mxu1 %v869_v12 }
  0x8e   :  { %1401 = vmatprep.subr.mxu0 %v1446_v10  ;;  %1420 = vmatprep.subr.mxu1 %v1446_v10 }
  0x8f   :  { %1402 = vmatpush3.msra.mxu0 %v1096_v0  ;;  %1421 = vmatpush3.msra.mxu1 %v868_v57 }
  0x90   :  { %1403 = vmatprep.subr.mxu0 %v1446_v10  ;;  %1422 = vmatprep.subr.mxu1 %v1446_v10 }
  0x91   :  { %1404 = vmatpush3.msra.mxu0 %v1095_v13  ;;  %1423 = vmatpush3.msra.mxu1 %v867_v14 }
  0x92   :  { %1405 = vmatprep.subr.mxu0 %v1446_v10  ;;  %1424 = vmatprep.subr.mxu1 %v1446_v10 }
  0x93   :  { %1406 = vmatpush3.msra.mxu0 %v1094_v15  ;;  %1425 = vmatpush3.msra.mxu1 %v866_v16 }
  0x94   :  { %1407 = vmatprep.subr.mxu0 %v1446_v10  ;;  %1426 = vmatprep.subr.mxu1 %v1446_v10 }
  0x95   :  { %1408 = vmatpush3.msra.mxu0 %v1093_v17  ;;  %1427 = vmatpush3.msra.mxu1 %v865_v18 }
  0x96   :  { %1409 = vmatprep.subr.mxu0 %v1446_v10  ;;  %1428 = vmatprep.subr.mxu1 %v1446_v10 }
  0x97   :  { %1410 = vmatpush3.msra.mxu0 %v1092_v19  ;;  %1429 = vmatpush3.msra.mxu1 %v864_v20 }
  0x98   :  { %1411 = vmatprep.subr.mxu0 %v1446_v10  ;;  %1430 = vmatprep.subr.mxu1 %v1446_v10 }
  0x99   :  { %1412 = vmatpush3.msra.mxu0 %v1091_v21  ;;  %1431 = vmatpush3.msra.mxu1 %v863_v22 }
  0x9a   :  { %1413 = vmatprep.subr.mxu0 %v1446_v10  ;;  %1432 = vmatprep.subr.mxu1 %v1446_v10 }
  0x9b   :  { %1414 = vmatpush3.msra.mxu0 %v1090_v23  ;;  %1415 = vmatprep.mubr.msk.f32.mxu0 %vm1447_vm0, %v1446_v10 }
  0x9c   :  { %1433 = vmatpush3.msra.mxu1 %v862_v24  ;;  %1434 = vmatprep.mubr.msk.f32.mxu1 %vm1447_vm0, %v1446_v10 }
  0xe4   :  { %v1133_v25 = vpop.f32.mrf.mxu0 }
  0xe5   :  { %v1168_v26 = vpop.f32.mrf.mxu1 }
  0xe6   :  { %v1134_v27 = vpop.f32.mrf.mxu0 }
  0xe7   :  { %v1169_v29 = vpop.f32.mrf.mxu1  ;;  %v1135_v33 = vadd.f32 %v1134_v27, %v1133_v25 }
  0xe8   :  { %v1170_v35 = vadd.f32 %v1169_v29, %v1168_v26 }
  0xed   :  { %v281_v36 = vpop.permute.xlu0 %280 }
  0xee   :  { %v361_v40 = vadd.f32 %v1135_v33, %v281_v36  ;;  %v431_v42 = vadd.f32 %v1170_v35, %v281_v36 }
  0xf0   :  { %v854_v46 = vmax.f32 %v361_v40, 0.0  ;;  %v855_v48 = vmax.f32 %v431_v42, 0.0 }
  0xf2   :  { %v887_v52 = vrot.slane %v854_v46, 1  ;;  %v981_v55 = vrot.slane %v855_v48, 7 }
  0xf4   :  { %v889_v61 = vsel %vm888_vm1, %v855_v48, %v887_v52  ;;  %v982_v2 = vsel %vm888_vm1, %v981_v55, %v854_v46 }
 0x106   :  { %v1203_v28 = vpop.f32.mrf.mxu0 }
 0x107   :  { %v1238_v30 = vpop.f32.mrf.mxu1 }
 0x108   :  { %v1204_v31 = vpop.f32.mrf.mxu0 }
 0x109   :  { %v1239_v34 = vpop.f32.mrf.mxu1  ;;  %v1205_v37 = vadd.f32 %v1204_v31, %v1203_v28 }
 0x10a   :  { %v1240_v41 = vadd.f32 %v1239_v34, %v1238_v30 }
 0x10b   :  { %v501_v43 = vadd.f32 %v1205_v37, %v281_v36 }
 0x10c   :  { %v571_v47 = vadd.f32 %v1240_v41, %v281_v36 }
 0x10d   :  { %v856_v49 = vmax.f32 %v501_v43, 0.0 }
 0x10e   :  { %v857_v53 = vmax.f32 %v571_v47, 0.0 }
 0x10f   :  { %v890_v54 = vrot.slane %v856_v49, 7  ;;  %v983_v58 = vrot.slane %v856_v49, 6 }
 0x110   :  { %v893_v62 = vrot.slane %v857_v53, 6  ;;  %v985_v3 = vrot.slane %v857_v53, 5 }
 0x111   :  { %v892_v1 = vsel %vm891_vm2, %v890_v54, %v889_v61  ;;  %v984_v6 = vsel %vm891_vm2, %v983_v58, %v982_v2 }
 0x112   :  { %v895_v12 = vsel %vm894_vm3, %v893_v62, %v892_v1  ;;  %v986_v57 = vsel %vm894_vm3, %v985_v3, %v984_v6 }
 0x128   :  { %v1273_v32 = vpop.f32.mrf.mxu0 }
 0x129   :  { %v1308_v38 = vpop.f32.mrf.mxu1 }
 0x12a   :  { %v1274_v39 = vpop.f32.mrf.mxu0 }
 0x12b   :  { %v1275_v44 = vadd.f32 %v1274_v39, %v1273_v32  ;;  %v1309_v45 = vpop.f32.mrf.mxu1  ;;  %v1100_v32 = vld [vmem:[%s2334_s4] ss:$0 sm:$0xff] }
 0x12c   :  { %v1310_v50 = vadd.f32 %v1309_v45, %v1308_v38 }
 0x12d   :  { %v641_v51 = vadd.f32 %v1275_v44, %v281_v36 }
 0x12e   :  { %v711_v56 = vadd.f32 %v1310_v50, %v281_v36 }
 0x12f   :  { %v858_v59 = vmax.f32 %v641_v51, 0.0 }
 0x130   :  { %v859_v4 = vmax.f32 %v711_v56, 0.0 }
 0x131   :  { %v896_v7 = vrot.slane %v858_v59, 5  ;;  %v987_v8 = vrot.slane %v858_v59, 4 }
 0x132   :  { %v899_v13 = vrot.slane %v859_v4, 4  ;;  %v989_v14 = vrot.slane %v859_v4, 3 }
 0x133   :  { %v898_v16 = vsel %vm897_vm4, %v896_v7, %v895_v12  ;;  %v988_v17 = vsel %vm897_vm4, %v987_v8, %v986_v57 }
 0x134   :  { %v901_v22 = vsel %vm900_vm5, %v899_v13, %v898_v16  ;;  %v990_v23 = vsel %vm900_vm5, %v989_v14, %v988_v17 }
 0x14b   :  { %v1343_v60 = vpop.f32.mrf.mxu0  ;;  %v1378_v63 = vpop.f32.mrf.mxu1 }
 0x14d   :  { %v1344_v5 = vpop.f32.mrf.mxu0  ;;  %v1379_v10 = vpop.f32.mrf.mxu1 }
 0x14e   :  { %v1345_v9 = vadd.f32 %v1344_v5, %v1343_v60  ;;  %v1380_v11 = vadd.f32 %v1379_v10, %v1378_v63 }
 0x150   :  { %v781_v0 = vadd.f32 %v1345_v9, %v281_v36  ;;  %v851_v15 = vadd.f32 %v1380_v11, %v281_v36 }
 0x152   :  { %v860_v18 = vmax.f32 %v781_v0, 0.0  ;;  %v861_v19 = vmax.f32 %v851_v15, 0.0 }
 0x154   :  { %v902_v20 = vrot.slane %v860_v18, 3  ;;  %v991_v21 = vrot.slane %v860_v18, 2  ;;  %v905_v24 = vrot.slane %v861_v19, 2  ;;  %v993_v25 = vrot.slane %v861_v19, 1 }
 0x156   :  { %v904_v26 = vsel %vm903_vm6, %v902_v20, %v901_v22  ;;  %v992_v27 = vsel %vm903_vm6, %v991_v21, %v990_v23 }
 0x157   :  { %v907_v28 = vsel %vm906_vm7, %v905_v24, %v904_v26  ;;  %v994_v29 = vsel %vm906_vm7, %v993_v25, %v992_v27 }
 0x158   :  { %1416 = vmatmul.mubr.msk.f32.vlgmr.msra.gmra.mxu0 %vm908_vm8, %v907_v28  ;;  %1435 = vmatmul.mubr.msk.f32.vlgmr.msra.gmra.mxu1 %vm908_vm8, %v994_v29 }
 0x218   :  { %v977_v30 = vpop.f32.mrf.mxu0  ;;  %v1063_v31 = vpop.f32.mrf.mxu1 }
 0x219   :  { %v1064_v33 = vadd.f32 %v1063_v31, %v977_v30 }
 0x21a   :  { %v1417_v34 = vpop.f32.mrf.mxu0  ;;  %v1436_v35 = vpop.f32.mrf.mxu1 }
 0x21b   :  { %v1074_v36 = vadd.f32 %v1100_v32, %v1064_v33 }
 0x21d   :  { %1075 = vmax.xlane.f32.xlu0 %v1074_v36 }
 0x2a6   :  { %v1076_v37 = vpop.xlane.xlu0 %1075 }
 0x2a7   :  { %v1077_v38 = vsub.f32 %v1074_v36, %v1076_v37 }
 0x2a9   :  { %v1078_v39 = vmul.f32 1.442695, %v1077_v38 }
 0x2ab   :  { %1441 = vpow2.f32 %v1078_v39 }
 0x2b8   :  { %v1442_v40 = vpop.eup %1441 }
 0x2b9   :  { %1080 = vadd.xlane.f32.xlu1 %v1442_v40 }
 0x342   :  { %v1081_v41 = vpop.xlane.xlu1 %1080 }
 0x343   :  { %1443 = vrcp.f32 %v1081_v41 }
 0x350   :  { %v1444_v42 = vpop.eup %1443 }
 0x351   :  { %v1083_v43 = vmul.f32 %v1444_v42, %v1442_v40 }
 0x353   :  { %1084 = vst [vmem:[%s2335_s5] sm:$0xff] %v1083_v43 }

</bundles_post_ra>
